<compile_context>
chip_gen: v6e
topology: v6e:2x2x1
jax: 0.10.0
libtpu: 0.0.40
codegen_flags: <defaults>
</compile_context>

<pallas_src>
import jax
import jax.numpy as jnp
from jax.experimental import pallas as pl
from jax.experimental.pallas import tpu as pltpu


def _round_up(n, m):
    return ((n + m - 1) // m) * m


def _mix_regression_kernel(b_ref, x_ref, w_ref, o_ref):
    # b_ref: SMEM (1,)   f32  bias
    # x_ref: VMEM (R,256) f32  interleaved rows: lanes [x0,x1,x0,x1,...] of 128 batches
    # w_ref: VMEM (256,128) f32  de-interleave weights (MXU gathers + reduces)
    # o_ref: VMEM (R,128) f32  lane-dense sigmoid output (128 batches per row)
    z = jnp.dot(x_ref[...], w_ref[...], preferred_element_type=jnp.float32)
    z = z + b_ref[0]
    # sigmoid(z) = 0.5 * tanh(z / 2) + 0.5  -> one EUP op, exact
    o_ref[...] = 0.5 * jnp.tanh(0.5 * z) + 0.5


def mix_regression(x, weight, bias, *, block_rows=2048):
    """Forward pass: sigmoid(x @ weight.T + bias).

    x:      [B, 2]  float32
    weight: [1, 2]  float32   (PyTorch nn.Linear weight layout)
    bias:   [1]     float32
    returns [B, 1]  float32
    """
    B, F = x.shape
    assert F == 2 and weight.shape == (1, 2)

    B_pad = _round_up(B, 128)
    x_flat = x.astype(jnp.float32).reshape(-1)          # free (row-major bitcast)
    if B_pad != B:
        # The only copying pass in the pipeline, and only when B % 128 != 0.
        x_flat = jnp.pad(x_flat, (0, 2 * (B_pad - B)))
    rows = B_pad // 128
    xr = x_flat.reshape(rows, 256)                       # free reshape

    # Row-tile selection: sublane-dense (multiple of 8) unless it covers the
    # full extent; split into >=2 grid steps when there is enough work.
    R = min(int(block_rows), rows)
    if rows >= 16:
        R = min(R, _round_up(pl.cdiv(rows, 2), 8))
    if R < rows:
        R = max(8, (R // 8) * 8)                         # ragged last block is fine
    grid_n = pl.cdiv(rows, R)

    # W[2j, j] = w0, W[2j+1, j] = w1  ->  (x_row @ W)[j] = w0*x0[j] + w1*x1[j]
    w = weight.astype(jnp.float32).reshape(2, 1)
    W = jnp.kron(jnp.eye(128, dtype=jnp.float32), w)     # (256, 128)
    b = bias.astype(jnp.float32).reshape(1)

    out = pl.pallas_call(
        _mix_regression_kernel,
        out_shape=jax.ShapeDtypeStruct((rows, 128), jnp.float32),
        grid=(grid_n,),
        in_specs=[
            pl.BlockSpec(memory_space=pltpu.MemorySpace.SMEM),   # bias scalar
            pl.BlockSpec((R, 256), lambda i: (i, 0)),            # x row-tile
            pl.BlockSpec((256, 128), lambda i: (0, 0)),          # W (resident, 1 DMA)
        ],
        out_specs=pl.BlockSpec((R, 128), lambda i: (i, 0)),
        compiler_params=pltpu.CompilerParams(
            dimension_semantics=("parallel",)),                  # v7x: both TCs
    )(b, xr, W)

    out_flat = out.reshape(-1)                           # batch order, free
    if B_pad != B:
        out_flat = out_flat[:B]
    return out_flat.reshape(B, 1)


if __name__ == "__main__":
    key = jax.random.PRNGKey(0)
    k_x, k_w, k_b = jax.random.split(key, 3)

    # Deterministic init matching weights_init_normal: Linear weight ~ N(0, 0.02).
    weight = 0.02 * jax.random.normal(k_w, (1, 2), dtype=jnp.float32)
    bias = 0.02 * jax.random.normal(k_b, (1,), dtype=jnp.float32)

    mix_jit = jax.jit(mix_regression, static_argnames=("block_rows",))

    # Case 1: B not a multiple of 128 -> padded input, single full-extent block.
    B1 = 300
    x1 = jax.random.normal(k_x, (B1, 2), dtype=jnp.float32)
    ref1 = jax.nn.sigmoid(x1 @ weight.T + bias)
    out1 = mix_jit(x1, weight, bias)
    jax.block_until_ready(out1)
    assert out1.shape == (B1, 1)
    assert jnp.allclose(out1, ref1, atol=2e-4, rtol=2e-4)

    # Case 2: B multiple of 128 -> zero-copy input path; rows=17, R=16 ->
    # 2-step grid with a ragged last block.
    B2 = 17 * 128
    x2 = jax.random.normal(k_x, (B2, 2), dtype=jnp.float32)
    ref2 = jax.nn.sigmoid(x2 @ weight.T + bias)
    out2 = mix_jit(x2, weight, bias)
    jax.block_until_ready(out2)
    assert out2.shape == (B2, 1)
    assert jnp.allclose(out2, ref2, atol=2e-4, rtol=2e-4)

    print("KERNEL_OK")
</pallas_src>

<mosaic_0001>
module attributes {stable_mosaic.version = 11 : i64} {
  func.func @_mix_regression_kernel(%arg0: i32, %arg1: memref<1xf32, #tpu.memory_space<smem>>, %arg2: memref<3x256xf32, #tpu.memory_space<vmem>>, %arg3: memref<256x128xf32, #tpu.memory_space<vmem>>, %arg4: memref<3x128xf32, #tpu.memory_space<vmem>>) attributes {dimension_semantics = [#tpu.dimension_semantics<parallel>], iteration_bounds = array<i64: 1>, scalar_prefetch = 0 : i64, scratch_operands = 0 : i64, tpu.core_type = #tpu.core_type<tc>, window_params = [{transform_indices = @transform_0, window_bounds = array<i64: 1>}, {transform_indices = @transform_1, window_bounds = array<i64: 3, 256>}, {pipeline_mode = #tpu.pipeline_mode<synchronous>, transform_indices = @transform_2, window_bounds = array<i64: 256, 128>}, {transform_indices = @transform_3, window_bounds = array<i64: 3, 128>}]} {
    %c0 = arith.constant 0 : index
    %c0_0 = arith.constant 0 : index
    %0 = vector.load %arg2[%c0, %c0_0] : memref<3x256xf32, #tpu.memory_space<vmem>>, vector<3x256xf32>
    %c0_1 = arith.constant 0 : index
    %c0_2 = arith.constant 0 : index
    %1 = vector.load %arg3[%c0_1, %c0_2] : memref<256x128xf32, #tpu.memory_space<vmem>>, vector<256x128xf32>
    %cst = arith.constant dense<0.000000e+00> : vector<3x128xf32>
    %2 = tpu.matmul %0, %1, %cst {dimension_numbers = #tpu.dot_dimension_numbers<[1], [0], [0], [1], [0, 0, 1, 1], [], []>} : vector<3x256xf32>, vector<256x128xf32>, vector<3x128xf32> -> vector<3x128xf32>
    %c0_3 = arith.constant 0 : index
    %3 = memref.load %arg1[%c0_3] : memref<1xf32, #tpu.memory_space<smem>>
    %4 = vector.broadcast %3 : f32 to vector<3x128xf32>
    %5 = arith.addf %2, %4 : vector<3x128xf32>
    %cst_4 = arith.constant 5.000000e-01 : f32
    %6 = vector.broadcast %cst_4 : f32 to vector<3x128xf32>
    %7 = arith.mulf %6, %5 : vector<3x128xf32>
    %8 = math.tanh %7 : vector<3x128xf32>
    %cst_5 = arith.constant 5.000000e-01 : f32
    %9 = vector.broadcast %cst_5 : f32 to vector<3x128xf32>
    %10 = arith.mulf %9, %8 : vector<3x128xf32>
    %cst_6 = arith.constant 5.000000e-01 : f32
    %11 = vector.broadcast %cst_6 : f32 to vector<3x128xf32>
    %12 = arith.addf %10, %11 : vector<3x128xf32>
    %c0_7 = arith.constant 0 : index
    %c0_8 = arith.constant 0 : index
    %13 = vector.load %arg4[%c0_7, %c0_8] : memref<3x128xf32, #tpu.memory_space<vmem>>, vector<3x128xf32>
    tpu.vector_store %arg4[%c0_7, %c0_8], %12 {strides = array<i32>} : memref<3x128xf32, #tpu.memory_space<vmem>>, vector<3x128xf32>,
    return
  }
  func.func @transform_0(%arg0: i32) -> i32 {
    %c0_i32 = arith.constant 0 : i32
    %c0_i32_0 = arith.constant 0 : i32
    return %c0_i32 : i32
  }
  func.func @transform_1(%arg0: i32) -> (i32, i32) {
    %c0_i32 = arith.constant 0 : i32
    %c0_i32_0 = arith.constant 0 : i32
    return %arg0, %c0_i32 : i32, i32
  }
  func.func @transform_2(%arg0: i32) -> (i32, i32) {
    %c0_i32 = arith.constant 0 : i32
    %c0_i32_0 = arith.constant 0 : i32
    %c0_i32_1 = arith.constant 0 : i32
    return %c0_i32, %c0_i32_0 : i32, i32
  }
  func.func @transform_3(%arg0: i32) -> (i32, i32) {
    %c0_i32 = arith.constant 0 : i32
    %c0_i32_0 = arith.constant 0 : i32
    return %arg0, %c0_i32 : i32, i32
  }
}

</mosaic_0001>

<bundles_post_ra>
// kernel: mix_regression.1
= control target key start
LH: loop header
LB: loop body
LE: loop exit
PB: predicated region body
PF: predicated region fallthrough
CT: control target
= control target key end

     0   :  { %s295_s2 = inlined_call_operand.vmem [shape: f32[256,128], index: 2, kind: input, shape index: {}]   ;;  %s296_s1 = inlined_call_operand.vmem [shape: f32[3,256], index: 1, kind: input, shape index: {}]   ;;  %s297_s0 = inlined_call_operand.<no memory space> [shape: f32[1], index: 0, kind: input, shape index: {}]   ;;  %s298_s3 = inlined_call_operand.vmem [shape: f32[3,128], index: 3, kind: output, shape index: {}]  }
   0x1   :  { %v47_v0 = vld [vmem:[%s295_s2 + $0xf8] sm:$0xff]  ;;  %v46_v2 = vld [vmem:[%s295_s2 + $0xf0] sm:$0xff]  ;;  %v45_v4 = vld [vmem:[%s295_s2 + $0xe8] sm:$0xff]  ;;  %v49_v35 = vstv %s297_s0 }
   0x2   :  { %v31_v1 = vld [vmem:[%s295_s2 + $0x78] sm:$0xff]  ;;  %132 = vmatprep.subr.mxu0 %v47_v0  ;;  %v30_v3 = vld [vmem:[%s295_s2 + $0x70] sm:$0xff]  ;;  %v29_v5 = vld [vmem:[%s295_s2 + $0x68] sm:$0xff] }
   0x3   :  { %133 = vmatpush3.msra.mxu0 %v31_v1  ;;  %v44_v6 = vld [vmem:[%s295_s2 + $0xe0] sm:$0xff]  ;;  %v43_v8 = vld [vmem:[%s295_s2 + $0xd8] sm:$0xff]  ;;  %v42_v10 = vld [vmem:[%s295_s2 + $0xd0] sm:$0xff] }
   0x4   :  { %134 = vmatprep.subr.mxu0 %v46_v2  ;;  %v28_v7 = vld [vmem:[%s295_s2 + $0x60] sm:$0xff]  ;;  %v27_v9 = vld [vmem:[%s295_s2 + $0x58] sm:$0xff]  ;;  %v26_v11 = vld [vmem:[%s295_s2 + $0x50] sm:$0xff] }
   0x5   :  { %135 = vmatpush3.msra.mxu0 %v30_v3  ;;  %v41_v12 = vld [vmem:[%s295_s2 + $0xc8] sm:$0xff]  ;;  %v15_v13 = vld [vmem:[%s296_s1] sm:$0x77]  ;;  %v39_v18 = vld [vmem:[%s295_s2 + $0xb8] sm:$0xff] }
   0x6   :  { %136 = vmatprep.subr.mxu0 %v45_v4  ;;  %v25_v14 = vld [vmem:[%s295_s2 + $0x48] sm:$0xff]  ;;  %v51_v15 = vcombine.high %v15_v13, %v15_v13  ;;  %v40_v16 = vld [vmem:[%s295_s2 + $0xc0] sm:$0xff]  ;;  %v23_v19 = vld [vmem:[%s295_s2 + $0x38] sm:$0xff] }
   0x7   :  { %137 = vmatpush3.msra.mxu0 %v29_v5  ;;  %v24_v17 = vld [vmem:[%s295_s2 + $0x40] sm:$0xff]  ;;  %v38_v20 = vld [vmem:[%s295_s2 + $0xb0] sm:$0xff]  ;;  %v37_v22 = vld [vmem:[%s295_s2 + $0xa8] sm:$0xff] }
   0x8   :  { %138 = vmatprep.subr.mxu0 %v44_v6  ;;  %117 = vmatprep.mubr.f32.mxu0 %v51_v15  ;;  %v22_v21 = vld [vmem:[%s295_s2 + $0x30] sm:$0xff]  ;;  %v21_v23 = vld [vmem:[%s295_s2 + $0x28] sm:$0xff]  ;;  %v36_v24 = vld [vmem:[%s295_s2 + $0xa0] sm:$0xff] }
   0x9   :  { %139 = vmatpush3.msra.mxu0 %v28_v7  ;;  %v20_v25 = vld [vmem:[%s295_s2 + $0x20] sm:$0xff]  ;;  %v35_v26 = vld [vmem:[%s295_s2 + $0x98] sm:$0xff]  ;;  %v34_v28 = vld [vmem:[%s295_s2 + $0x90] sm:$0xff] }
   0xa   :  { %140 = vmatprep.subr.mxu0 %v43_v8  ;;  %v19_v27 = vld [vmem:[%s295_s2 + $0x18] sm:$0xff]  ;;  %v18_v29 = vld [vmem:[%s295_s2 + $0x10] sm:$0xff]  ;;  %v33_v30 = vld [vmem:[%s295_s2 + $0x88] sm:$0xff] }
   0xb   :  { %141 = vmatpush3.msra.mxu0 %v27_v9  ;;  %v17_v31 = vld [vmem:[%s295_s2 + $0x8] sm:$0xff]  ;;  %v32_v32 = vld [vmem:[%s295_s2 + $0x80] sm:$0xff] }
   0xc   :  { %142 = vmatprep.subr.mxu0 %v42_v10  ;;  %v16_v33 = vld [vmem:[%s295_s2] sm:$0xff] }
   0xd   :  { %143 = vmatpush3.msra.mxu0 %v26_v11 }
   0xe   :  { %144 = vmatprep.subr.mxu0 %v41_v12 }
   0xf   :  { %145 = vmatpush3.msra.mxu0 %v25_v14 }
  0x10   :  { %146 = vmatprep.subr.mxu0 %v40_v16 }
  0x11   :  { %147 = vmatpush3.msra.mxu0 %v24_v17 }
  0x12   :  { %148 = vmatprep.subr.mxu0 %v39_v18 }
  0x13   :  { %149 = vmatpush3.msra.mxu0 %v23_v19 }
  0x14   :  { %150 = vmatprep.subr.mxu0 %v38_v20 }
  0x15   :  { %151 = vmatpush3.msra.mxu0 %v22_v21 }
  0x16   :  { %152 = vmatprep.subr.mxu0 %v37_v22 }
  0x17   :  { %153 = vmatpush3.msra.mxu0 %v21_v23 }
  0x18   :  { %154 = vmatprep.subr.mxu0 %v36_v24 }
  0x19   :  { %155 = vmatpush3.msra.mxu0 %v20_v25 }
  0x1a   :  { %156 = vmatprep.subr.mxu0 %v35_v26 }
  0x1b   :  { %157 = vmatpush3.msra.mxu0 %v19_v27 }
  0x1c   :  { %158 = vmatprep.subr.mxu0 %v34_v28 }
  0x1d   :  { %159 = vmatpush3.msra.mxu0 %v18_v29 }
  0x1e   :  { %160 = vmatprep.subr.mxu0 %v33_v30 }
  0x1f   :  { %161 = vmatpush3.msra.mxu0 %v17_v31 }
  0x20   :  { %162 = vmatprep.subr.mxu0 %v32_v32 }
  0x21   :  { %163 = vmatpush3.msra.mxu0 %v16_v33 }
  0x22   :  { %118 = vmatmul.mubr.f32.vlgmr.msra.gmra.mxu0 %v15_v13 }
  0xe2   :  { %v164_v34 = vpop.f32.mrf.mxu0 }
  0xe4   :  { %v165_v36 = vpop.f32.mrf.mxu0 }
  0xe5   :  { %v166_v37 = vadd.f32 %v165_v36, %v164_v34 }
  0xe7   :  { %v120_v38 = vadd.f32 %v166_v37, %v49_v35 }
  0xe9   :  { %v123_v39 = vmul.f32 0.5, %v120_v38 }
  0xeb   :  { %168 = vtanh.f32 %v123_v39 }
  0xf8   :  { %v169_v40 = vpop.eup %168 }
  0xf9   :  { %v125_v41 = vmul.f32 0.5, %v169_v40 }
  0xfb   :  { %v126_v42 = vadd.f32 0.5, %v125_v41 }
  0xfd   :  { %127 = vst [vmem:[%s298_s3] sm:$0x7] %v126_v42 }

</bundles_post_ra>
